<compile_context>
chip_gen: v7x
topology: tpu7x:2x2x1
jax: 0.10.0
libtpu: 0.0.40
codegen_flags: <defaults>
</compile_context>

<pallas_src>
import jax
import jax.numpy as jnp
from jax.experimental import pallas as pl
from jax.experimental.pallas import tpu as pltpu

T_DIM = 256        # input_dim  (t_dim)
C_DIM = 128        # hidden_dim (c_dim)  -> lane-dense outputs (128 lanes)
NEG_SLOPE = 0.01   # nn.LeakyReLU() default


# ----------------------------- Pallas kernel --------------------------------
def ca_net_kernel(x_ref, w_ref, b_ref, eps_ref, c_ref, mu_ref, lv_ref):
    # x_ref:   (tm, T)      row tile of text embeddings
    # w_ref:   (T, 2C)      pre-transposed Linear weight
    # b_ref:   (1, 2C)      Linear bias
    # eps_ref: (tm, C)      standard-normal noise
    h = jnp.dot(x_ref[...], w_ref[...], preferred_element_type=jnp.float32)
    h = h + b_ref[...]
    h = jnp.where(h > 0, h, NEG_SLOPE * h)          # LeakyReLU(0.01)
    c = mu_ref.shape[-1]
    mu = h[:, :c]
    logvar = h[:, c:]
    std = jnp.exp(0.5 * logvar)                     # EUP transcendental
    mu_ref[...] = mu.astype(mu_ref.dtype)
    lv_ref[...] = logvar.astype(lv_ref.dtype)
    c_ref[...] = (eps_ref[...] * std + mu).astype(c_ref.dtype)


def ca_net_forward(x, w, b, eps):
    """Fused CA_NET forward.  x:(B,T)  w:(T,2C)  b:(1,2C)  eps:(B,C)."""
    B, T = x.shape
    two_c = w.shape[1]
    C = two_c // 2

    # Row tile: whole (sublane-padded) batch if it fits, else 1024-row tiles.
    tm = min(1024, ((B + 7) // 8) * 8)
    M = ((B + tm - 1) // tm) * tm                   # pad batch to tile multiple
    pad = M - B
    if pad:
        x = jnp.pad(x, ((0, pad), (0, 0)))
        eps = jnp.pad(eps, ((0, pad), (0, 0)))
    grid = (M // tm,)

    out_shape = tuple(jax.ShapeDtypeStruct((M, C), jnp.float32) for _ in range(3))
    c_code, mu, logvar = pl.pallas_call(
        ca_net_kernel,
        out_shape=out_shape,
        grid_spec=pltpu.PrefetchScalarGridSpec(
            num_scalar_prefetch=0,
            grid=grid,
            in_specs=[
                pl.BlockSpec((tm, T), lambda i: (i, 0)),
                pl.BlockSpec((T, two_c), lambda i: (0, 0)),
                pl.BlockSpec((1, two_c), lambda i: (0, 0)),
                pl.BlockSpec((tm, C), lambda i: (i, 0)),
            ],
            out_specs=[
                pl.BlockSpec((tm, C), lambda i: (i, 0)),
                pl.BlockSpec((tm, C), lambda i: (i, 0)),
                pl.BlockSpec((tm, C), lambda i: (i, 0)),
            ],
        ),
        compiler_params=pltpu.CompilerParams(
            dimension_semantics=("parallel",)),
    )(x, w, b, eps)

    if pad:
        c_code, mu, logvar = c_code[:B], mu[:B], logvar[:B]
    return c_code, mu, logvar


# ------------------------------ reference -----------------------------------
def reference_forward(x, w, b, eps):
    h = x @ w + b
    h = jnp.where(h > 0, h, NEG_SLOPE * h)
    C = w.shape[1] // 2
    mu, logvar = h[:, :C], h[:, C:]
    c_code = eps * jnp.exp(0.5 * logvar) + mu
    return c_code, mu, logvar


if __name__ == "__main__":
    key = jax.random.PRNGKey(0)
    kx, kw, kb, ke = jax.random.split(key, 4)

    B = 8
    x = jax.random.normal(kx, (B, T_DIM), jnp.float32)

    # PyTorch Linear stores weight as (out_features, in_features) = (2C, T);
    # pre-transpose once at parameter-prep time (hoisted out of the kernel path).
    w_pt = 0.05 * jax.random.normal(kw, (2 * C_DIM, T_DIM), jnp.float32)
    w = jnp.transpose(w_pt)                               # (T, 2C)
    b = 0.05 * jax.random.normal(kb, (1, 2 * C_DIM), jnp.float32)
    eps = jax.random.normal(ke, (B, C_DIM), jnp.float32)  # reparameterization noise

    fwd = jax.jit(ca_net_forward)
    c_code, mu, logvar = jax.block_until_ready(fwd(x, w, b, eps))

    assert c_code.shape == (B, C_DIM), c_code.shape
    assert mu.shape == (B, C_DIM) and logvar.shape == (B, C_DIM)

    c_ref, mu_ref, lv_ref = reference_forward(x, w, b, eps)
    assert jnp.allclose(mu, mu_ref, atol=1e-4, rtol=1e-4), (
        float(jnp.max(jnp.abs(mu - mu_ref))))
    assert jnp.allclose(logvar, lv_ref, atol=1e-4, rtol=1e-4), (
        float(jnp.max(jnp.abs(logvar - lv_ref))))
    assert jnp.allclose(c_code, c_ref, atol=1e-4, rtol=1e-4), (
        float(jnp.max(jnp.abs(c_code - c_ref))))

    print("KERNEL_OK")
</pallas_src>

<mosaic_0001>
module attributes {stable_mosaic.version = 11 : i64} {
  func.func @ca_net_kernel(%arg0: i32, %arg1: memref<8x256xf32, #tpu.memory_space<vmem>>, %arg2: memref<256x256xf32, #tpu.memory_space<vmem>>, %arg3: memref<1x256xf32, #tpu.memory_space<vmem>>, %arg4: memref<8x128xf32, #tpu.memory_space<vmem>>, %arg5: memref<8x128xf32, #tpu.memory_space<vmem>>, %arg6: memref<8x128xf32, #tpu.memory_space<vmem>>, %arg7: memref<8x128xf32, #tpu.memory_space<vmem>>) attributes {dimension_semantics = [#tpu.dimension_semantics<parallel>], iteration_bounds = array<i64: 1>, scalar_prefetch = 0 : i64, scratch_operands = 0 : i64, tpu.core_type = #tpu.core_type<tc>, window_params = [{transform_indices = @transform_0, window_bounds = array<i64: 8, 256>}, {pipeline_mode = #tpu.pipeline_mode<synchronous>, transform_indices = @transform_1, window_bounds = array<i64: 256, 256>}, {pipeline_mode = #tpu.pipeline_mode<synchronous>, transform_indices = @transform_2, window_bounds = array<i64: 1, 256>}, {transform_indices = @transform_3, window_bounds = array<i64: 8, 128>}, {transform_indices = @transform_4, window_bounds = array<i64: 8, 128>}, {transform_indices = @transform_5, window_bounds = array<i64: 8, 128>}, {transform_indices = @transform_6, window_bounds = array<i64: 8, 128>}]} {
    %c0 = arith.constant 0 : index
    %c0_0 = arith.constant 0 : index
    %0 = vector.load %arg1[%c0, %c0_0] : memref<8x256xf32, #tpu.memory_space<vmem>>, vector<8x256xf32>
    %c0_1 = arith.constant 0 : index
    %c0_2 = arith.constant 0 : index
    %1 = vector.load %arg2[%c0_1, %c0_2] : memref<256x256xf32, #tpu.memory_space<vmem>>, vector<256x256xf32>
    %cst = arith.constant dense<0.000000e+00> : vector<8x256xf32>
    %2 = tpu.matmul %0, %1, %cst {dimension_numbers = #tpu.dot_dimension_numbers<[1], [0], [0], [1], [0, 0, 1, 1], [], []>} : vector<8x256xf32>, vector<256x256xf32>, vector<8x256xf32> -> vector<8x256xf32>
    %c0_3 = arith.constant 0 : index
    %c0_4 = arith.constant 0 : index
    %3 = vector.load %arg3[%c0_3, %c0_4] : memref<1x256xf32, #tpu.memory_space<vmem>>, vector<1x256xf32>
    %4 = vector.broadcast %3 : vector<1x256xf32> to vector<8x256xf32>
    %5 = arith.addf %2, %4 : vector<8x256xf32>
    %cst_5 = arith.constant 0.000000e+00 : f32
    %6 = vector.broadcast %cst_5 : f32 to vector<8x256xf32>
    %7 = arith.cmpf ogt, %5, %6 : vector<8x256xf32>
    %cst_6 = arith.constant 0.00999999977 : f32
    %8 = vector.broadcast %cst_6 : f32 to vector<8x256xf32>
    %9 = arith.mulf %8, %5 : vector<8x256xf32>
    %10 = arith.select %7, %5, %9 : vector<8x256xi1>, vector<8x256xf32>
    %11 = vector.extract_strided_slice %10 {offsets = [0, 0], sizes = [8, 128], strides = [1, 1]} : vector<8x256xf32> to vector<8x128xf32>
    %12 = vector.extract_strided_slice %10 {offsets = [0, 128], sizes = [8, 128], strides = [1, 1]} : vector<8x256xf32> to vector<8x128xf32>
    %cst_7 = arith.constant 5.000000e-01 : f32
    %13 = vector.broadcast %cst_7 : f32 to vector<8x128xf32>
    %14 = arith.mulf %13, %12 : vector<8x128xf32>
    %15 = math.exp %14 : vector<8x128xf32>
    %c0_8 = arith.constant 0 : index
    %c0_9 = arith.constant 0 : index
    %16 = vector.load %arg6[%c0_8, %c0_9] : memref<8x128xf32, #tpu.memory_space<vmem>>, vector<8x128xf32>
    tpu.vector_store %arg6[%c0_8, %c0_9], %11 {strides = array<i32>} : memref<8x128xf32, #tpu.memory_space<vmem>>, vector<8x128xf32>,
    %c0_10 = arith.constant 0 : index
    %c0_11 = arith.constant 0 : index
    %17 = vector.load %arg7[%c0_10, %c0_11] : memref<8x128xf32, #tpu.memory_space<vmem>>, vector<8x128xf32>
    tpu.vector_store %arg7[%c0_10, %c0_11], %12 {strides = array<i32>} : memref<8x128xf32, #tpu.memory_space<vmem>>, vector<8x128xf32>,
    %c0_12 = arith.constant 0 : index
    %c0_13 = arith.constant 0 : index
    %18 = vector.load %arg4[%c0_12, %c0_13] : memref<8x128xf32, #tpu.memory_space<vmem>>, vector<8x128xf32>
    %19 = arith.mulf %18, %15 : vector<8x128xf32>
    %20 = arith.addf %19, %11 : vector<8x128xf32>
    %c0_14 = arith.constant 0 : index
    %c0_15 = arith.constant 0 : index
    %21 = vector.load %arg5[%c0_14, %c0_15] : memref<8x128xf32, #tpu.memory_space<vmem>>, vector<8x128xf32>
    tpu.vector_store %arg5[%c0_14, %c0_15], %20 {strides = array<i32>} : memref<8x128xf32, #tpu.memory_space<vmem>>, vector<8x128xf32>,
    return
  }
  func.func @transform_0(%arg0: i32) -> (i32, i32) {
    %c0_i32 = arith.constant 0 : i32
    %c0_i32_0 = arith.constant 0 : i32
    return %arg0, %c0_i32 : i32, i32
  }
  func.func @transform_1(%arg0: i32) -> (i32, i32) {
    %c0_i32 = arith.constant 0 : i32
    %c0_i32_0 = arith.constant 0 : i32
    %c0_i32_1 = arith.constant 0 : i32
    return %c0_i32, %c0_i32_0 : i32, i32
  }
  func.func @transform_2(%arg0: i32) -> (i32, i32) {
    %c0_i32 = arith.constant 0 : i32
    %c0_i32_0 = arith.constant 0 : i32
    %c0_i32_1 = arith.constant 0 : i32
    return %c0_i32, %c0_i32_0 : i32, i32
  }
  func.func @transform_3(%arg0: i32) -> (i32, i32) {
    %c0_i32 = arith.constant 0 : i32
    %c0_i32_0 = arith.constant 0 : i32
    return %arg0, %c0_i32 : i32, i32
  }
  func.func @transform_4(%arg0: i32) -> (i32, i32) {
    %c0_i32 = arith.constant 0 : i32
    %c0_i32_0 = arith.constant 0 : i32
    return %arg0, %c0_i32 : i32, i32
  }
  func.func @transform_5(%arg0: i32) -> (i32, i32) {
    %c0_i32 = arith.constant 0 : i32
    %c0_i32_0 = arith.constant 0 : i32
    return %arg0, %c0_i32 : i32, i32
  }
  func.func @transform_6(%arg0: i32) -> (i32, i32) {
    %c0_i32 = arith.constant 0 : i32
    %c0_i32_0 = arith.constant 0 : i32
    return %arg0, %c0_i32 : i32, i32
  }
}

</mosaic_0001>

<bundles_post_ra>
// kernel: ca_net_forward.1
= control target key start
LH: loop header
LB: loop body
LE: loop exit
PB: predicated region body
PF: predicated region fallthrough
CT: control target
= control target key end

     0   :  { %12 = vsyncpa [#allocation3], 0  ;;  %s568_s0 = inlined_call_operand.hbm [shape: f32[8,256], index: 0, kind: input, shape index: {}]   ;;  %s569_s1 = inlined_call_operand.hbm [shape: f32[256,256], index: 1, kind: input, shape index: {}]   ;;  %s570_s2 = inlined_call_operand.vmem [shape: f32[1,256], index: 2, kind: input, shape index: {}]   ;;  %s571_s3 = inlined_call_operand.vmem [shape: f32[8,128], index: 3, kind: input, shape index: {}]   ;;  %s572_s4 = inlined_call_operand.hbm [shape: f32[8,128], index: 4, kind: output, shape index: {0}]   ;;  %s573_s5 = inlined_call_operand.hbm [shape: f32[8,128], index: 5, kind: output, shape index: {1}]   ;;  %s574_s6 = inlined_call_operand.hbm [shape: f32[8,128], index: 6, kind: output, shape index: {2}]  }
   0x1   :  { %13 = vsyncpa [#allocation6], 0 }
   0x2   :  { %14 = vsyncpa [#allocation4], 0 }
   0x3   :  { %15 = vsyncpa [#allocation9], 0  ;;  %s446_s21 = smov [#allocation2]   ;;  %s447_s23 = smov [#allocation5]  }
   0x4   :  { %s22_s22 = sshll.u32 %s446_s21, 4  ;;  %s31_s24 = sshll.u32 %s447_s23, 4  ;;  %s23_s22 = int_to_ptr.vmem [resolvable:$true] %s22_s22  ;;  %s488_s24 = int_to_ptr.vmem [resolvable:$true] %s31_s24 }
   0x5   :  { %s328_s27 = scalar_lea.hbm %s568_s0, 256 }
   0x6   :  { %p329_p0 = scmp.ne.s32.totalorder %s568_s0, %s328_s27  ;;  %p332_p1 = scmp.lt.u32.totalorder %s328_s27, %s568_s0 }
   0x8   :  { %p334_p2 = pnand %p332_p1, %p329_p0 }
   0xa   :  { %337 = shalt.err (!%p334_p2)
}
   0xb   :  { %s338_s8 = scalar_lea.vmem %s23_s22, 256  ;;  %p343_p4 = scmp.lt.s32.totalorder %s23_s22, %s23_s22 }
   0xc   :  { %p339_p3 = scmp.ne.s32.totalorder %s23_s22, %s338_s8  ;;  %p344_p5 = scmp.lt.s32.totalorder %s338_s8, %s338_s8 }
   0xe   :  { %p345_p6 = por %p344_p5, %p343_p4 }
  0x10   :  { %p346_p7 = pnand %p345_p6, %p339_p3 }
  0x12   :  { %349 = shalt.err (!%p346_p7)
}
  0x13   :  { %25 = dma.hbm_to_vmem [thread:$0]  %s568_s0, 256, %s23_s22, [#allocation3]  }
  0x14   :  { %s350_s13 = scalar_lea.hbm %s569_s1, 8192 }
  0x15   :  { %p351_p8 = scmp.ne.s32.totalorder %s569_s1, %s350_s13  ;;  %p354_p9 = scmp.lt.u32.totalorder %s350_s13, %s569_s1 }
  0x17   :  { %p356_p10 = pnand %p354_p9, %p351_p8 }
  0x19   :  { %359 = shalt.err (!%p356_p10)
}
  0x1a   :  { %s360_s18 = scalar_lea.vmem %s488_s24, 8192  ;;  %p365_p12 = scmp.lt.s32.totalorder %s488_s24, %s488_s24 }
  0x1b   :  { %p361_p11 = scmp.ne.s32.totalorder %s488_s24, %s360_s18  ;;  %p366_p13 = scmp.lt.s32.totalorder %s360_s18, %s360_s18 }
  0x1d   :  { %p367_p0 = por %p366_p13, %p365_p12 }
  0x1f   :  { %p368_p1 = pnand %p367_p0, %p361_p11 }
  0x21   :  { %371 = shalt.err (!%p368_p1)
}
  0x22   :  { %s448_s0 = smov 256   ;;  %s449_s19 = smov 16  }
  0x23   :  { %37 = dma.hbm_to_vmem [thread:$0]  %s569_s1, 8192, %s488_s24, [#allocation6], %s448_s0, %s448_s0, %s449_s19  }
  0x24   :  { %438 = dma.done.wait [#allocation3], 256  }
  0x25   :  { %439 = vsyncadd [#allocation3], 4294967040 }
  0x26   :  { %440 = dma.done.wait [#allocation6], 8192  }
  0x27   :  { %441 = vsyncadd [#allocation6], 4294959104  ;;  %v51_v0 = vld [vmem:[#allocation5 + $0x8] sm:$0xff]  ;;  %v53_v1 = vld [vmem:[#allocation5 + $0x18] sm:$0xff]  ;;  %s450_s23 = smov [#allocation8]   ;;  %s451_s25 = smov [#allocation10]  }
  0x28   :  { %v50_v2 = vld [vmem:[#allocation5] sm:$0xff]  ;;  %v255_v3 = vpack.c.bf16 %v53_v1, %v51_v0  ;;  %v52_v4 = vld [vmem:[#allocation5 + $0x10] sm:$0xff]  ;;  %v55_v5 = vld [vmem:[#allocation5 + $0x28] sm:$0xff]  ;;  %s228_s24 = sshll.u32 %s450_s23, 4  ;;  %s238_s26 = sshll.u32 %s451_s25, 4  ;;  %s229_s24 = int_to_ptr.vmem [resolvable:$true] %s228_s24  ;;  %s522_s26 = int_to_ptr.vmem [resolvable:$true] %s238_s26 }
  0x29   :  { %v57_v6 = vld [vmem:[#allocation5 + $0x38] sm:$0xff]  ;;  %v257_v7 = vpack.c.bf16 %v52_v4, %v50_v2  ;;  %v54_v9 = vld [vmem:[#allocation5 + $0x20] sm:$0xff]  ;;  %v56_v10 = vld [vmem:[#allocation5 + $0x30] sm:$0xff]  ;;  %p377_p3 = scmp.lt.s32.totalorder %s229_s24, %s229_s24 }
  0x2a   :  { %v259_v8 = vpack.c.bf16 %v57_v6, %v55_v5  ;;  %v59_v11 = vld [vmem:[#allocation5 + $0x48] sm:$0xff]  ;;  %256 = vmatprep.subr.bf16.mxu0 %v255_v3  ;;  %v61_v12 = vld [vmem:[#allocation5 + $0x58] sm:$0xff]  ;;  %v261_v13 = vpack.c.bf16 %v56_v10, %v54_v9  ;;  %v58_v15 = vld [vmem:[#allocation5 + $0x40] sm:$0xff] }
  0x2b   :  { %258 = vmatpush1.bf16.msra.mxu0 %v257_v7  ;;  %v263_v14 = vpack.c.bf16 %v61_v12, %v59_v11  ;;  %v60_v16 = vld [vmem:[#allocation5 + $0x50] sm:$0xff]  ;;  %v63_v17 = vld [vmem:[#allocation5 + $0x68] sm:$0xff]  ;;  %v65_v18 = vld [vmem:[#allocation5 + $0x78] sm:$0xff] }
  0x2c   :  { %260 = vmatprep.subr.bf16.mxu0 %v259_v8  ;;  %v265_v19 = vpack.c.bf16 %v60_v16, %v58_v15  ;;  %v267_v20 = vpack.c.bf16 %v65_v18, %v63_v17  ;;  %v62_v21 = vld [vmem:[#allocation5 + $0x60] sm:$0xff]  ;;  %v64_v22 = vld [vmem:[#allocation5 + $0x70] sm:$0xff]  ;;  %v67_v23 = vld [vmem:[#allocation5 + $0x88] sm:$0xff] }
  0x2d   :  { %v69_v24 = vld [vmem:[#allocation5 + $0x98] sm:$0xff]  ;;  %v269_v25 = vpack.c.bf16 %v64_v22, %v62_v21  ;;  %v66_v27 = vld [vmem:[#allocation5 + $0x80] sm:$0xff]  ;;  %v68_v28 = vld [vmem:[#allocation5 + $0x90] sm:$0xff] }
  0x2e   :  { %v271_v26 = vpack.c.bf16 %v69_v24, %v67_v23  ;;  %v71_v29 = vld [vmem:[#allocation5 + $0xa8] sm:$0xff]  ;;  %v73_v30 = vld [vmem:[#allocation5 + $0xb8] sm:$0xff]  ;;  %v273_v31 = vpack.c.bf16 %v68_v28, %v66_v27  ;;  %v70_v33 = vld [vmem:[#allocation5 + $0xa0] sm:$0xff] }
  0x2f   :  { %262 = vmatpush1.bf16.msra.mxu0 %v261_v13  ;;  %v275_v32 = vpack.c.bf16 %v73_v30, %v71_v29  ;;  %v72_v34 = vld [vmem:[#allocation5 + $0xb0] sm:$0xff]  ;;  %v75_v35 = vld [vmem:[#allocation5 + $0xc8] sm:$0xff]  ;;  %v77_v36 = vld [vmem:[#allocation5 + $0xd8] sm:$0xff] }
  0x30   :  { %264 = vmatprep.subr.bf16.mxu0 %v263_v14  ;;  %v277_v37 = vpack.c.bf16 %v72_v34, %v70_v33  ;;  %v279_v38 = vpack.c.bf16 %v77_v36, %v75_v35  ;;  %v74_v39 = vld [vmem:[#allocation5 + $0xc0] sm:$0xff]  ;;  %v76_v40 = vld [vmem:[#allocation5 + $0xd0] sm:$0xff]  ;;  %v49_v41 = vld [vmem:[#allocation2 + $0x8] sm:$0xff]  ;;  %v116_v34 = vlaneseq }
  0x31   :  { %v79_v42 = vld [vmem:[#allocation5 + $0xe8] sm:$0xff]  ;;  %v81_v43 = vld [vmem:[#allocation5 + $0xf8] sm:$0xff]  ;;  %190 = vmatprep.mubr.f32.mxu0 %v49_v41  ;;  %v281_v44 = vpack.c.bf16 %v76_v40, %v74_v39  ;;  %v78_v46 = vld [vmem:[#allocation5 + $0xe0] sm:$0xff] }
  0x32   :  { %v283_v45 = vpack.c.bf16 %v81_v43, %v79_v42  ;;  %v80_v47 = vld [vmem:[#allocation5 + $0xf0] sm:$0xff]  ;;  %v83_v48 = vld [vmem:[#allocation5 + $0x108] sm:$0xff]  ;;  %v85_v49 = vld [vmem:[#allocation5 + $0x118] sm:$0xff]  ;;  %v117_v35 = vshrl.u32 %v116_v34, 7 }
  0x33   :  { %266 = vmatpush1.bf16.msra.mxu0 %v265_v19  ;;  %v285_v50 = vpack.c.bf16 %v80_v47, %v78_v46  ;;  %v287_v51 = vpack.c.bf16 %v85_v49, %v83_v48  ;;  %v82_v52 = vld [vmem:[#allocation5 + $0x100] sm:$0xff]  ;;  %v84_v53 = vld [vmem:[#allocation5 + $0x110] sm:$0xff]  ;;  %v87_v54 = vld [vmem:[#allocation5 + $0x128] sm:$0xff] }
  0x34   :  { %268 = vmatprep.subr.bf16.mxu0 %v267_v20  ;;  %v89_v55 = vld [vmem:[#allocation5 + $0x138] sm:$0xff]  ;;  %v289_v56 = vpack.c.bf16 %v84_v53, %v82_v52  ;;  %v86_v58 = vld [vmem:[#allocation5 + $0x120] sm:$0xff]  ;;  %v88_v59 = vld [vmem:[#allocation5 + $0x130] sm:$0xff]  ;;  %v118_v36 = vsub.s32 0, %v117_v35 }
  0x35   :  { %v291_v57 = vpack.c.bf16 %v89_v55, %v87_v54  ;;  %v91_v60 = vld [vmem:[#allocation5 + $0x148] sm:$0xff]  ;;  %v93_v61 = vld [vmem:[#allocation5 + $0x158] sm:$0xff]  ;;  %v293_v62 = vpack.c.bf16 %v88_v59, %v86_v58  ;;  %v90_v0 = vld [vmem:[#allocation5 + $0x140] sm:$0xff] }
  0x36   :  { %v295_v63 = vpack.c.bf16 %v93_v61, %v91_v60  ;;  %v92_v1 = vld [vmem:[#allocation5 + $0x150] sm:$0xff]  ;;  %v95_v2 = vld [vmem:[#allocation5 + $0x168] sm:$0xff]  ;;  %v97_v3 = vld [vmem:[#allocation5 + $0x178] sm:$0xff] }
  0x37   :  { %270 = vmatpush1.bf16.msra.mxu0 %v269_v25  ;;  %v297_v4 = vpack.c.bf16 %v92_v1, %v90_v0  ;;  %v299_v5 = vpack.c.bf16 %v97_v3, %v95_v2  ;;  %v94_v6 = vld [vmem:[#allocation5 + $0x160] sm:$0xff]  ;;  %v96_v7 = vld [vmem:[#allocation5 + $0x170] sm:$0xff]  ;;  %v99_v8 = vld [vmem:[#allocation5 + $0x188] sm:$0xff] }
  0x38   :  { %272 = vmatprep.subr.bf16.mxu0 %v271_v26  ;;  %v101_v9 = vld [vmem:[#allocation5 + $0x198] sm:$0xff]  ;;  %v301_v10 = vpack.c.bf16 %v96_v7, %v94_v6  ;;  %v98_v12 = vld [vmem:[#allocation5 + $0x180] sm:$0xff]  ;;  %v100_v13 = vld [vmem:[#allocation5 + $0x190] sm:$0xff] }
  0x39   :  { %v303_v11 = vpack.c.bf16 %v101_v9, %v99_v8  ;;  %v103_v14 = vld [vmem:[#allocation5 + $0x1a8] sm:$0xff]  ;;  %v105_v15 = vld [vmem:[#allocation5 + $0x1b8] sm:$0xff]  ;;  %v305_v16 = vpack.c.bf16 %v100_v13, %v98_v12  ;;  %v102_v18 = vld [vmem:[#allocation5 + $0x1a0] sm:$0xff] }
  0x3a   :  { %v307_v17 = vpack.c.bf16 %v105_v15, %v103_v14  ;;  %v104_v19 = vld [vmem:[#allocation5 + $0x1b0] sm:$0xff]  ;;  %v107_v20 = vld [vmem:[#allocation5 + $0x1c8] sm:$0xff]  ;;  %v109_v21 = vld [vmem:[#allocation5 + $0x1d8] sm:$0xff] }
  0x3b   :  { %274 = vmatpush1.bf16.msra.mxu0 %v273_v31  ;;  %v309_v22 = vpack.c.bf16 %v104_v19, %v102_v18  ;;  %v311_v23 = vpack.c.bf16 %v109_v21, %v107_v20  ;;  %v106_v24 = vld [vmem:[#allocation5 + $0x1c0] sm:$0xff]  ;;  %v108_v25 = vld [vmem:[#allocation5 + $0x1d0] sm:$0xff]  ;;  %v111_v26 = vld [vmem:[#allocation5 + $0x1e8] sm:$0xff] }
  0x3c   :  { %276 = vmatprep.subr.bf16.mxu0 %v275_v32  ;;  %v113_v27 = vld [vmem:[#allocation5 + $0x1f8] sm:$0xff]  ;;  %v313_v28 = vpack.c.bf16 %v108_v25, %v106_v24  ;;  %v110_v30 = vld [vmem:[#allocation5 + $0x1e0] sm:$0xff]  ;;  %v112_v31 = vld [vmem:[#allocation5 + $0x1f0] sm:$0xff] }
  0x3d   :  { %v315_v29 = vpack.c.bf16 %v113_v27, %v111_v26  ;;  %v317_v32 = vpack.c.bf16 %v112_v31, %v110_v30  ;;  %v48_v33 = vld [vmem:[#allocation2] sm:$0xff] }
  0x3f   :  { %278 = vmatpush1.bf16.msra.mxu0 %v277_v37  ;;  %v114_v37 = vld [vmem:[%s570_s2] sm:$0x3]  ;;  %s372_s2 = scalar_lea.vmem %s229_s24, 128 }
  0x40   :  { %280 = vmatprep.subr.bf16.mxu0 %v279_v38  ;;  %v122_v38 = vsub.s32 1, %v117_v35  ;;  %v119_v39 = vrot.slane %v114_v37, %v118_v36  ;;  %p373_p2 = scmp.ne.s32.totalorder %s229_s24, %s372_s2  ;;  %p378_p4 = scmp.lt.s32.totalorder %s372_s2, %s372_s2 }
  0x42   :  { %v123_v40 = vrot.slane %v114_v37, %v122_v38  ;;  %p379_p5 = por %p378_p4, %p377_p3 }
  0x43   :  { %282 = vmatpush1.bf16.msra.mxu0 %v281_v44 }
  0x44   :  { %284 = vmatprep.subr.bf16.mxu0 %v283_v45  ;;  %p380_p6 = pnand %p379_p5, %p373_p2 }
  0x47   :  { %286 = vmatpush1.bf16.msra.mxu0 %v285_v50 }
  0x48   :  { %288 = vmatprep.subr.bf16.mxu0 %v287_v51 }
  0x4b   :  { %290 = vmatpush1.bf16.msra.mxu0 %v289_v56 }
  0x4c   :  { %292 = vmatprep.subr.bf16.mxu0 %v291_v57 }
  0x4f   :  { %294 = vmatpush1.bf16.msra.mxu0 %v293_v62 }
  0x50   :  { %296 = vmatprep.subr.bf16.mxu0 %v295_v63 }
  0x53   :  { %298 = vmatpush1.bf16.msra.mxu0 %v297_v4 }
  0x54   :  { %300 = vmatprep.subr.bf16.mxu0 %v299_v5 }
  0x57   :  { %302 = vmatpush1.bf16.msra.mxu0 %v301_v10 }
  0x58   :  { %304 = vmatprep.subr.bf16.mxu0 %v303_v11 }
  0x5b   :  { %306 = vmatpush1.bf16.msra.mxu0 %v305_v16 }
  0x5c   :  { %308 = vmatprep.subr.bf16.mxu0 %v307_v17 }
  0x5f   :  { %310 = vmatpush1.bf16.msra.mxu0 %v309_v22 }
  0x60   :  { %312 = vmatprep.subr.bf16.mxu0 %v311_v23 }
  0x63   :  { %314 = vmatpush1.bf16.msra.mxu0 %v313_v28 }
  0x64   :  { %316 = vmatprep.subr.bf16.mxu0 %v315_v29 }
  0x67   :  { %318 = vmatpush1.bf16.msra.mxu0 %v317_v32 }
  0x6a   :  { %191 = vmatmul.mubr.f32.vlgmr.msra.gmra.mrb[0].mxu0 %v48_v33 }
 0x13d   :  { %v192_v41 = vpop.f32.mrb[0].mxu0 }
 0x13e   :  { %v193_v42 = vadd.f32 %v192_v41, %v119_v39  ;;  %v194_v43 = vpop.f32.mrb[1].mxu0 }
 0x13f   :  { %v195_v44 = vadd.f32 %v194_v43, %v123_v40 }
 0x140   :  { %v199_v45 = vmul.f32 0.01, %v193_v42  ;;  %vm197_vm0 = vcmp.gt.f32.partialorder %v193_v42, 0.0 }
 0x141   :  { %vm198_vm1 = vcmp.gt.f32.partialorder %v195_v44, 0.0  ;;  %v200_v46 = vmul.f32 0.01, %v195_v44 }
 0x142   :  { %v201_v47 = vsel %vm197_vm0, %v193_v42, %v199_v45 }
 0x143   :  { %v202_v48 = vsel %vm198_vm1, %v195_v44, %v200_v46  ;;  %206 = vst [vmem:[#allocation8] sm:$0xff] %v201_v47 }
 0x144   :  { %v203_v49 = vmul.f32 0.5, %v202_v48  ;;  %207 = vst [vmem:[#allocation10] sm:$0xff] %v202_v48 }
 0x145   :  { %383 = shalt.err (!%p380_p6)
}
 0x146   :  { %s384_s29 = scalar_lea.hbm %s573_s5, 128 }
 0x147   :  { %p385_p7 = scmp.ne.s32.totalorder %s573_s5, %s384_s29  ;;  %p388_p8 = scmp.lt.u32.totalorder %s384_s29, %s573_s5 }
 0x149   :  { %p390_p9 = pnand %p388_p8, %p385_p7 }
 0x14b   :  { %393 = shalt.err (!%p390_p9)
}
 0x14c   :  { %231 = dma.vmem_to_hbm [thread:$0]  %s229_s24, 128, %s573_s5, [#allocation9]  }
 0x14d   :  { %s394_s12 = scalar_lea.vmem %s522_s26, 128  ;;  %p399_p11 = scmp.lt.s32.totalorder %s522_s26, %s522_s26 }
 0x14e   :  { %p395_p10 = scmp.ne.s32.totalorder %s522_s26, %s394_s12  ;;  %p400_p12 = scmp.lt.s32.totalorder %s394_s12, %s394_s12 }
 0x150   :  { %p401_p13 = por %p400_p12, %p399_p11 }
 0x152   :  { %p402_p0 = pnand %p401_p13, %p395_p10 }
 0x154   :  { %405 = shalt.err (!%p402_p0)
}
 0x155   :  { %s406_s15 = scalar_lea.hbm %s574_s6, 128 }
 0x156   :  { %p407_p1 = scmp.ne.s32.totalorder %s574_s6, %s406_s15  ;;  %p410_p2 = scmp.lt.u32.totalorder %s406_s15, %s574_s6 }
 0x158   :  { %p412_p3 = pnand %p410_p2, %p407_p1 }
 0x15a   :  { %415 = shalt.err (!%p412_p3)
}
 0x15b   :  { %241 = dma.vmem_to_hbm [thread:$0]  %s522_s26, 128, %s574_s6, [#allocation9]   ;;  %v204_v50 = vmul.f32 1.442695, %v203_v49  ;;  %v208_v51 = vld [vmem:[%s571_s3] sm:$0xff] }
 0x15c   :  { %s452_s1 = smov [#allocation7]  }
 0x15d   :  { %326 = vpow2.f32 %v204_v50  ;;  %s218_s22 = sshll.u32 %s452_s1, 4  ;;  %s219_s22 = int_to_ptr.vmem [resolvable:$true] %s218_s22 }
 0x15e   :  { %s416_s23 = scalar_lea.vmem %s219_s22, 128  ;;  %p421_p5 = scmp.lt.s32.totalorder %s219_s22, %s219_s22 }
 0x15f   :  { %p417_p4 = scmp.ne.s32.totalorder %s219_s22, %s416_s23  ;;  %p422_p6 = scmp.lt.s32.totalorder %s416_s23, %s416_s23 }
 0x161   :  { %p423_p7 = por %p422_p6, %p421_p5 }
 0x163   :  { %p424_p8 = pnand %p423_p7, %p417_p4 }
 0x167   :  { %v327_v52 = vpop.eup %326 }
 0x168   :  { %v209_v53 = vmul.f32 %v327_v52, %v208_v51 }
 0x16a   :  { %v210_v54 = vadd.f32 %v209_v53, %v201_v47 }
 0x16c   :  { %211 = vst [vmem:[#allocation7] sm:$0xff] %v210_v54 }
 0x16d   :  { %427 = shalt.err (!%p424_p8)
}
 0x16e   :  { %s428_s25 = scalar_lea.hbm %s572_s4, 128 }
 0x16f   :  { %p429_p9 = scmp.ne.s32.totalorder %s572_s4, %s428_s25  ;;  %p432_p10 = scmp.lt.u32.totalorder %s428_s25, %s572_s4 }
 0x171   :  { %p434_p11 = pnand %p432_p10, %p429_p9 }
 0x173   :  { %437 = shalt.err (!%p434_p11)
}
 0x174   :  { %221 = dma.vmem_to_hbm [thread:$0]  %s219_s22, 128, %s572_s4, [#allocation4]  }
 0x175   :  { %442 = dma.done.wait [#allocation4], 128  }
 0x176   :  { %443 = vsyncadd [#allocation4], 4294967168 }
 0x177   :  { %444 = dma.done.wait [#allocation9], 256  }
 0x178   :  { %445 = vsyncadd [#allocation9], 4294967040 }
 0x179   :  { %251 = vsyncpa [#allocation3], 1 }
 0x17a   :  { %252 = vsyncpa [#allocation6], 1 }
 0x17b   :  { %253 = vsyncpa [#allocation4], 1 }
 0x17c   :  { %254 = vsyncpa [#allocation9], 1 }

</bundles_post_ra>
